<compile_context>
chip_gen: v7x
topology: tpu7x:2x2x1
jax: 0.10.0
libtpu: 0.0.40
codegen_flags: <defaults>
</compile_context>

<pallas_src>
import jax
import jax.numpy as jnp
from jax.experimental import pallas as pl
from jax.experimental.pallas import tpu as pltpu

LANE = 128     # pad all feature dims to a multiple of the lane width
SUBLANE = 8    # batch tile must be a multiple of the sublane count


def _round_up(n, m):
    return (n + m - 1) // m * m


def _pad2d(a, rows, cols):
    return jnp.pad(a, ((0, rows - a.shape[0]), (0, cols - a.shape[1])))


def decoder_kernel(x_ref,
                   w3_ref, b3_ref,
                   w4_ref, b4_ref,
                   w5_ref, b5_ref,
                   w6_ref, b6_ref,
                   o_ref):
    # fc3 -> relu   (bf16 MXU matmul, f32 accumulate, f32 epilogue)
    h = jnp.dot(x_ref[...], w3_ref[...], preferred_element_type=jnp.float32)
    h = jnp.maximum(h + b3_ref[...], 0.0)
    # fc4 -> relu
    h = jnp.dot(h.astype(jnp.bfloat16), w4_ref[...],
                preferred_element_type=jnp.float32)
    h = jnp.maximum(h + b4_ref[...], 0.0)
    # fc5 -> relu
    h = jnp.dot(h.astype(jnp.bfloat16), w5_ref[...],
                preferred_element_type=jnp.float32)
    h = jnp.maximum(h + b5_ref[...], 0.0)
    # fc6 -> sigmoid
    logits = jnp.dot(h.astype(jnp.bfloat16), w6_ref[...],
                     preferred_element_type=jnp.float32)
    logits = logits + b6_ref[...]
    o_ref[...] = jax.nn.sigmoid(logits).astype(o_ref.dtype)


def prepare_kernel_params(params):
    """Zero-pad every feature dim to a multiple of 128 and cast weights to bf16.

    Zero padding keeps the math exact: padded input lanes are zero, padded
    weight rows/cols and bias lanes are zero, so padded hidden lanes stay 0
    through ReLU and contribute nothing downstream.  Biases stay f32 ([1, N])
    for the f32 epilogue.
    """
    def prep(w, b):
        kin = _round_up(w.shape[0], LANE)
        kout = _round_up(w.shape[1], LANE)
        w_p = _pad2d(w, kin, kout).astype(jnp.bfloat16)
        b_p = _pad2d(b, 1, kout).astype(jnp.float32)
        return w_p, b_p

    out = {}
    for n in ("3", "4", "5", "6"):
        w_p, b_p = prep(params["w" + n], params["b" + n])
        out["w" + n], out["b" + n] = w_p, b_p
    return out


def decoder_forward(x, kparams, input_dim):
    """x: [B, latent_dim] f32.  kparams: padded bf16 weights / f32 biases."""
    w3, b3 = kparams["w3"], kparams["b3"]
    w4, b4 = kparams["w4"], kparams["b4"]
    w5, b5 = kparams["w5"], kparams["b5"]
    w6, b6 = kparams["w6"], kparams["b6"]

    B = x.shape[0]
    lat_pad = w3.shape[0]
    out_pad = w6.shape[1]
    hid_pad = w4.shape[0]

    # Batch tile: up to 256 rows per grid step (fills MXU rows on v6e/v7x),
    # always a multiple of the sublane count; pad batch so the grid divides.
    tm = min(256, _round_up(B, SUBLANE))
    b_pad = _round_up(B, tm)
    grid = (b_pad // tm,)

    # Zero-pad batch rows / latent lanes; bf16 halves the activation DMA.
    x_p = _pad2d(x, b_pad, lat_pad).astype(jnp.bfloat16)

    # Weights/biases: same block for every grid step -> resident in VMEM.
    def resident(a):
        nd = a.ndim
        return pl.BlockSpec(a.shape, lambda i, _nd=nd: (0,) * _nd)

    flops = 2 * b_pad * (lat_pad * hid_pad + 2 * hid_pad * hid_pad
                         + hid_pad * out_pad)
    bytes_accessed = (x_p.size * 2 + b_pad * out_pad * 4
                      + sum(a.size * 2 for a in (w3, w4, w5, w6))
                      + sum(a.size * 4 for a in (b3, b4, b5, b6)))
    cost = pl.CostEstimate(flops=int(flops),
                           transcendentals=int(b_pad * out_pad),
                           bytes_accessed=int(bytes_accessed))

    out_full = pl.pallas_call(
        decoder_kernel,
        out_shape=jax.ShapeDtypeStruct((b_pad, out_pad), jnp.float32),
        grid_spec=pltpu.PrefetchScalarGridSpec(
            num_scalar_prefetch=0,
            grid=grid,
            in_specs=[pl.BlockSpec((tm, lat_pad), lambda i: (i, 0)),
                      resident(w3), resident(b3),
                      resident(w4), resident(b4),
                      resident(w5), resident(b5),
                      resident(w6), resident(b6)],
            out_specs=pl.BlockSpec((tm, out_pad), lambda i: (i, 0)),
        ),
        compiler_params=pltpu.CompilerParams(
            dimension_semantics=("parallel",),   # shard batch over TCs on v7x
            vmem_limit_bytes=32 * 1024 * 1024),
        cost_estimate=cost,
    )(x_p, w3, b3, w4, b4, w5, b5, w6, b6)

    # Padded lanes hold sigmoid(0) = 0.5 garbage; slice back to logical shape.
    return out_full[:B, :input_dim]


def init_params(key, input_dim, hidden_dim, latent_dim):
    """Deterministic synthetic init (uniform, PyTorch-Linear-like scale).

    Weights are stored transposed ([in, out]) so the kernel does plain
    row-major matmuls; biases are [1, out] for lane broadcasting.
    """
    def linear(k, fan_in, fan_out):
        kw, kb = jax.random.split(k)
        bound = 1.0 / jnp.sqrt(fan_in)
        w = jax.random.uniform(kw, (fan_in, fan_out), jnp.float32, -bound, bound)
        b = jax.random.uniform(kb, (1, fan_out), jnp.float32, -bound, bound)
        return w, b

    k3, k4, k5, k6 = jax.random.split(key, 4)
    w3, b3 = linear(k3, latent_dim, hidden_dim)
    w4, b4 = linear(k4, hidden_dim, hidden_dim)
    w5, b5 = linear(k5, hidden_dim, hidden_dim)
    w6, b6 = linear(k6, hidden_dim, input_dim)
    return dict(w3=w3, b3=b3, w4=w4, b4=b4, w5=w5, b5=b5, w6=w6, b6=b6)


def decoder_ref(x, p):
    """Pure-JAX f32 reference (mirrors the PyTorch forward)."""
    h = jax.nn.relu(x @ p["w3"] + p["b3"])
    h = jax.nn.relu(h @ p["w4"] + p["b4"])
    h = jax.nn.relu(h @ p["w5"] + p["b5"])
    return jax.nn.sigmoid(h @ p["w6"] + p["b6"])


if __name__ == "__main__":
    # Small shapes consistent with the module: x is [batch, latent_dim].
    batch, input_dim, hidden_dim, latent_dim = 8, 64, 32, 16

    key = jax.random.PRNGKey(0)
    kp, kx = jax.random.split(key)
    params = init_params(kp, input_dim, hidden_dim, latent_dim)
    kparams = prepare_kernel_params(params)
    x = jax.random.normal(kx, (batch, latent_dim), jnp.float32)

    out = decoder_forward(x, kparams, input_dim)
    out = jax.block_until_ready(out)

    ref = decoder_ref(x, params)
    assert out.shape == (batch, input_dim)
    # bf16 matmul operands (f32 accumulate) vs. f32 reference -> loose tol.
    assert jnp.allclose(out, ref, atol=2e-2, rtol=2e-2), (
        float(jnp.max(jnp.abs(out - ref))))

    print("KERNEL_OK")
</pallas_src>

<mosaic_0001>
module attributes {stable_mosaic.version = 11 : i64} {
  func.func @decoder_kernel(%arg0: i32, %arg1: memref<8x128xbf16, #tpu.memory_space<vmem>>, %arg2: memref<128x128xbf16, #tpu.memory_space<vmem>>, %arg3: memref<1x128xf32, #tpu.memory_space<vmem>>, %arg4: memref<128x128xbf16, #tpu.memory_space<vmem>>, %arg5: memref<1x128xf32, #tpu.memory_space<vmem>>, %arg6: memref<128x128xbf16, #tpu.memory_space<vmem>>, %arg7: memref<1x128xf32, #tpu.memory_space<vmem>>, %arg8: memref<128x128xbf16, #tpu.memory_space<vmem>>, %arg9: memref<1x128xf32, #tpu.memory_space<vmem>>, %arg10: memref<8x128xf32, #tpu.memory_space<vmem>>) attributes {dimension_semantics = [#tpu.dimension_semantics<parallel>], iteration_bounds = array<i64: 1>, scalar_prefetch = 0 : i64, scratch_operands = 0 : i64, tpu.core_type = #tpu.core_type<tc>, window_params = [{transform_indices = @transform_0, window_bounds = array<i64: 8, 128>}, {pipeline_mode = #tpu.pipeline_mode<synchronous>, transform_indices = @transform_1, window_bounds = array<i64: 128, 128>}, {pipeline_mode = #tpu.pipeline_mode<synchronous>, transform_indices = @transform_2, window_bounds = array<i64: 1, 128>}, {pipeline_mode = #tpu.pipeline_mode<synchronous>, transform_indices = @transform_3, window_bounds = array<i64: 128, 128>}, {pipeline_mode = #tpu.pipeline_mode<synchronous>, transform_indices = @transform_4, window_bounds = array<i64: 1, 128>}, {pipeline_mode = #tpu.pipeline_mode<synchronous>, transform_indices = @transform_5, window_bounds = array<i64: 128, 128>}, {pipeline_mode = #tpu.pipeline_mode<synchronous>, transform_indices = @transform_6, window_bounds = array<i64: 1, 128>}, {pipeline_mode = #tpu.pipeline_mode<synchronous>, transform_indices = @transform_7, window_bounds = array<i64: 128, 128>}, {pipeline_mode = #tpu.pipeline_mode<synchronous>, transform_indices = @transform_8, window_bounds = array<i64: 1, 128>}, {transform_indices = @transform_9, window_bounds = array<i64: 8, 128>}]} {
    %c0 = arith.constant 0 : index
    %c0_0 = arith.constant 0 : index
    %0 = vector.load %arg1[%c0, %c0_0] : memref<8x128xbf16, #tpu.memory_space<vmem>>, vector<8x128xbf16>
    %c0_1 = arith.constant 0 : index
    %c0_2 = arith.constant 0 : index
    %1 = vector.load %arg2[%c0_1, %c0_2] : memref<128x128xbf16, #tpu.memory_space<vmem>>, vector<128x128xbf16>
    %cst = arith.constant dense<0.000000e+00> : vector<8x128xf32>
    %2 = tpu.matmul %0, %1, %cst {dimension_numbers = #tpu.dot_dimension_numbers<[1], [0], [0], [1], [0, 0, 1, 1], [], []>} : vector<8x128xbf16>, vector<128x128xbf16>, vector<8x128xf32> -> vector<8x128xf32>
    %c0_3 = arith.constant 0 : index
    %c0_4 = arith.constant 0 : index
    %3 = vector.load %arg3[%c0_3, %c0_4] : memref<1x128xf32, #tpu.memory_space<vmem>>, vector<1x128xf32>
    %4 = vector.broadcast %3 : vector<1x128xf32> to vector<8x128xf32>
    %5 = arith.addf %2, %4 : vector<8x128xf32>
    %cst_5 = arith.constant 0.000000e+00 : f32
    %6 = vector.broadcast %cst_5 : f32 to vector<8x128xf32>
    %7 = arith.maximumf %5, %6 : vector<8x128xf32>
    %8 = arith.truncf %7 : vector<8x128xf32> to vector<8x128xbf16>
    %c0_6 = arith.constant 0 : index
    %c0_7 = arith.constant 0 : index
    %9 = vector.load %arg4[%c0_6, %c0_7] : memref<128x128xbf16, #tpu.memory_space<vmem>>, vector<128x128xbf16>
    %cst_8 = arith.constant dense<0.000000e+00> : vector<8x128xf32>
    %10 = tpu.matmul %8, %9, %cst_8 {dimension_numbers = #tpu.dot_dimension_numbers<[1], [0], [0], [1], [0, 0, 1, 1], [], []>} : vector<8x128xbf16>, vector<128x128xbf16>, vector<8x128xf32> -> vector<8x128xf32>
    %c0_9 = arith.constant 0 : index
    %c0_10 = arith.constant 0 : index
    %11 = vector.load %arg5[%c0_9, %c0_10] : memref<1x128xf32, #tpu.memory_space<vmem>>, vector<1x128xf32>
    %12 = vector.broadcast %11 : vector<1x128xf32> to vector<8x128xf32>
    %13 = arith.addf %10, %12 : vector<8x128xf32>
    %cst_11 = arith.constant 0.000000e+00 : f32
    %14 = vector.broadcast %cst_11 : f32 to vector<8x128xf32>
    %15 = arith.maximumf %13, %14 : vector<8x128xf32>
    %16 = arith.truncf %15 : vector<8x128xf32> to vector<8x128xbf16>
    %c0_12 = arith.constant 0 : index
    %c0_13 = arith.constant 0 : index
    %17 = vector.load %arg6[%c0_12, %c0_13] : memref<128x128xbf16, #tpu.memory_space<vmem>>, vector<128x128xbf16>
    %cst_14 = arith.constant dense<0.000000e+00> : vector<8x128xf32>
    %18 = tpu.matmul %16, %17, %cst_14 {dimension_numbers = #tpu.dot_dimension_numbers<[1], [0], [0], [1], [0, 0, 1, 1], [], []>} : vector<8x128xbf16>, vector<128x128xbf16>, vector<8x128xf32> -> vector<8x128xf32>
    %c0_15 = arith.constant 0 : index
    %c0_16 = arith.constant 0 : index
    %19 = vector.load %arg7[%c0_15, %c0_16] : memref<1x128xf32, #tpu.memory_space<vmem>>, vector<1x128xf32>
    %20 = vector.broadcast %19 : vector<1x128xf32> to vector<8x128xf32>
    %21 = arith.addf %18, %20 : vector<8x128xf32>
    %cst_17 = arith.constant 0.000000e+00 : f32
    %22 = vector.broadcast %cst_17 : f32 to vector<8x128xf32>
    %23 = arith.maximumf %21, %22 : vector<8x128xf32>
    %24 = arith.truncf %23 : vector<8x128xf32> to vector<8x128xbf16>
    %c0_18 = arith.constant 0 : index
    %c0_19 = arith.constant 0 : index
    %25 = vector.load %arg8[%c0_18, %c0_19] : memref<128x128xbf16, #tpu.memory_space<vmem>>, vector<128x128xbf16>
    %cst_20 = arith.constant dense<0.000000e+00> : vector<8x128xf32>
    %26 = tpu.matmul %24, %25, %cst_20 {dimension_numbers = #tpu.dot_dimension_numbers<[1], [0], [0], [1], [0, 0, 1, 1], [], []>} : vector<8x128xbf16>, vector<128x128xbf16>, vector<8x128xf32> -> vector<8x128xf32>
    %c0_21 = arith.constant 0 : index
    %c0_22 = arith.constant 0 : index
    %27 = vector.load %arg9[%c0_21, %c0_22] : memref<1x128xf32, #tpu.memory_space<vmem>>, vector<1x128xf32>
    %28 = vector.broadcast %27 : vector<1x128xf32> to vector<8x128xf32>
    %29 = arith.addf %26, %28 : vector<8x128xf32>
    %30 = arith.negf %29 : vector<8x128xf32>
    %31 = math.exp %30 : vector<8x128xf32>
    %cst_23 = arith.constant 1.000000e+00 : f32
    %32 = vector.broadcast %cst_23 : f32 to vector<8x128xf32>
    %33 = arith.addf %32, %31 : vector<8x128xf32>
    %34 = arith.divf %32, %33 : vector<8x128xf32>
    %c0_24 = arith.constant 0 : index
    %c0_25 = arith.constant 0 : index
    %35 = vector.load %arg10[%c0_24, %c0_25] : memref<8x128xf32, #tpu.memory_space<vmem>>, vector<8x128xf32>
    tpu.vector_store %arg10[%c0_24, %c0_25], %34 {strides = array<i32>} : memref<8x128xf32, #tpu.memory_space<vmem>>, vector<8x128xf32>,
    return
  }
  func.func @transform_0(%arg0: i32) -> (i32, i32) {
    %c0_i32 = arith.constant 0 : i32
    %c0_i32_0 = arith.constant 0 : i32
    return %arg0, %c0_i32 : i32, i32
  }
  func.func @transform_1(%arg0: i32) -> (i32, i32) {
    %c0_i32 = arith.constant 0 : i32
    %c0_i32_0 = arith.constant 0 : i32
    %c0_i32_1 = arith.constant 0 : i32
    return %c0_i32, %c0_i32_0 : i32, i32
  }
  func.func @transform_2(%arg0: i32) -> (i32, i32) {
    %c0_i32 = arith.constant 0 : i32
    %c0_i32_0 = arith.constant 0 : i32
    %c0_i32_1 = arith.constant 0 : i32
    return %c0_i32, %c0_i32_0 : i32, i32
  }
  func.func @transform_3(%arg0: i32) -> (i32, i32) {
    %c0_i32 = arith.constant 0 : i32
    %c0_i32_0 = arith.constant 0 : i32
    %c0_i32_1 = arith.constant 0 : i32
    return %c0_i32, %c0_i32_0 : i32, i32
  }
  func.func @transform_4(%arg0: i32) -> (i32, i32) {
    %c0_i32 = arith.constant 0 : i32
    %c0_i32_0 = arith.constant 0 : i32
    %c0_i32_1 = arith.constant 0 : i32
    return %c0_i32, %c0_i32_0 : i32, i32
  }
  func.func @transform_5(%arg0: i32) -> (i32, i32) {
    %c0_i32 = arith.constant 0 : i32
    %c0_i32_0 = arith.constant 0 : i32
    %c0_i32_1 = arith.constant 0 : i32
    return %c0_i32, %c0_i32_0 : i32, i32
  }
  func.func @transform_6(%arg0: i32) -> (i32, i32) {
    %c0_i32 = arith.constant 0 : i32
    %c0_i32_0 = arith.constant 0 : i32
    %c0_i32_1 = arith.constant 0 : i32
    return %c0_i32, %c0_i32_0 : i32, i32
  }
  func.func @transform_7(%arg0: i32) -> (i32, i32) {
    %c0_i32 = arith.constant 0 : i32
    %c0_i32_0 = arith.constant 0 : i32
    %c0_i32_1 = arith.constant 0 : i32
    return %c0_i32, %c0_i32_0 : i32, i32
  }
  func.func @transform_8(%arg0: i32) -> (i32, i32) {
    %c0_i32 = arith.constant 0 : i32
    %c0_i32_0 = arith.constant 0 : i32
    %c0_i32_1 = arith.constant 0 : i32
    return %c0_i32, %c0_i32_0 : i32, i32
  }
  func.func @transform_9(%arg0: i32) -> (i32, i32) {
    %c0_i32 = arith.constant 0 : i32
    %c0_i32_0 = arith.constant 0 : i32
    return %arg0, %c0_i32 : i32, i32
  }
}

</mosaic_0001>

<bundles_post_ra>
// kernel: tpu_custom_call.1
= control target key start
LH: loop header
LB: loop body
LE: loop exit
PB: predicated region body
PF: predicated region fallthrough
CT: control target
= control target key end

     0   :  { %14 = vsyncpa [#allocation3], 0  ;;  %s1110_s0 = inlined_call_operand.hbm [shape: bf16[8,128], index: 0, kind: input, shape index: {}]   ;;  %s1111_s1 = inlined_call_operand.hbm [shape: bf16[128,128], index: 1, kind: input, shape index: {}]   ;;  %s1112_s2 = inlined_call_operand.vmem [shape: f32[1,128], index: 2, kind: input, shape index: {}]   ;;  %s1113_s3 = inlined_call_operand.hbm [shape: bf16[128,128], index: 3, kind: input, shape index: {}]   ;;  %s1114_s4 = inlined_call_operand.vmem [shape: f32[1,128], index: 4, kind: input, shape index: {}]   ;;  %s1115_s5 = inlined_call_operand.hbm [shape: bf16[128,128], index: 5, kind: input, shape index: {}]   ;;  %s1116_s6 = inlined_call_operand.vmem [shape: f32[1,128], index: 6, kind: input, shape index: {}]   ;;  %s1117_s7 = inlined_call_operand.hbm [shape: bf16[128,128], index: 7, kind: input, shape index: {}]   ;;  %s1118_s8 = inlined_call_operand.vmem [shape: f32[1,128], index: 8, kind: input, shape index: {}]   ;;  %s1119_s9 = inlined_call_operand.hbm [shape: f32[8,128], index: 9, kind: output, shape index: {}]  }
   0x1   :  { %15 = vsyncpa [#allocation6], 0 }
   0x2   :  { %16 = vsyncpa [#allocation9], 0 }
   0x3   :  { %17 = vsyncpa [#allocation4], 0  ;;  %s914_s30 = smov [#allocation5]   ;;  %s774_s13 = scalar_lea.hbm %s1111_s1, 1024 }
   0x4   :  { %s33_s10 = sshll.u32 %s914_s30, 4  ;;  %p775_p0 = scmp.ne.s32.totalorder %s1111_s1, %s774_s13  ;;  %s34_s10 = int_to_ptr.vmem [resolvable:$true] %s33_s10 }
   0x5   :  { %p778_p1 = scmp.lt.u32.totalorder %s774_s13, %s1111_s1 }
   0x7   :  { %p780_p2 = pnand %p778_p1, %p775_p0 }
   0x9   :  { %783 = shalt.err (!%p780_p2)
}
   0xa   :  { %s784_s18 = scalar_lea.vmem %s34_s10, 1024  ;;  %p789_p4 = scmp.lt.s32.totalorder %s34_s10, %s34_s10 }
   0xb   :  { %p785_p3 = scmp.ne.s32.totalorder %s34_s10, %s784_s18  ;;  %p790_p5 = scmp.lt.s32.totalorder %s784_s18, %s784_s18 }
   0xd   :  { %p791_p6 = por %p790_p5, %p789_p4 }
   0xf   :  { %p792_p7 = pnand %p791_p6, %p785_p3 }
  0x11   :  { %795 = shalt.err (!%p792_p7)
}
  0x12   :  { %s915_s19 = smov 64   ;;  %s916_s20 = smov 4  }
  0x13   :  { %39 = dma.hbm_to_vmem [thread:$0]  %s1111_s1, 1024, %s34_s10, [#allocation6], %s915_s19, %s915_s19, %s916_s20  }
  0x14   :  { %s917_s23 = smov [#allocation8]   ;;  %s918_s25 = smov [#allocation2]  }
  0x15   :  { %s61_s24 = sshll.u32 %s917_s23, 4  ;;  %s24_s26 = sshll.u32 %s918_s25, 4  ;;  %s62_s24 = int_to_ptr.vmem [resolvable:$true] %s61_s24  ;;  %s25_s26 = int_to_ptr.vmem [resolvable:$true] %s24_s26 }
  0x16   :  { %s796_s29 = scalar_lea.hbm %s1115_s5, 1024 }
  0x17   :  { %p797_p8 = scmp.ne.s32.totalorder %s1115_s5, %s796_s29  ;;  %p800_p9 = scmp.lt.u32.totalorder %s796_s29, %s1115_s5 }
  0x19   :  { %p802_p10 = pnand %p800_p9, %p797_p8 }
  0x1b   :  { %805 = shalt.err (!%p802_p10)
}
  0x1c   :  { %s806_s1 = scalar_lea.vmem %s62_s24, 1024  ;;  %p811_p12 = scmp.lt.s32.totalorder %s62_s24, %s62_s24 }
  0x1d   :  { %p807_p11 = scmp.ne.s32.totalorder %s62_s24, %s806_s1  ;;  %p812_p13 = scmp.lt.s32.totalorder %s806_s1, %s806_s1 }
  0x1f   :  { %p813_p0 = por %p812_p13, %p811_p12 }
  0x21   :  { %p814_p1 = pnand %p813_p0, %p807_p11 }
  0x23   :  { %817 = shalt.err (!%p814_p1)
}
  0x24   :  { %67 = dma.hbm_to_vmem [thread:$0]  %s1115_s5, 1024, %s62_s24, [#allocation9], %s915_s19, %s915_s19, %s916_s20  }
  0x25   :  { %s818_s17 = scalar_lea.hbm %s1110_s0, 64 }
  0x26   :  { %p819_p2 = scmp.ne.s32.totalorder %s1110_s0, %s818_s17  ;;  %p822_p3 = scmp.lt.u32.totalorder %s818_s17, %s1110_s0 }
  0x28   :  { %p824_p4 = pnand %p822_p3, %p819_p2 }
  0x2a   :  { %827 = shalt.err (!%p824_p4)
}
  0x2b   :  { %s828_s25 = scalar_lea.vmem %s25_s26, 64  ;;  %p833_p6 = scmp.lt.s32.totalorder %s25_s26, %s25_s26 }
  0x2c   :  { %p829_p5 = scmp.ne.s32.totalorder %s25_s26, %s828_s25  ;;  %p834_p7 = scmp.lt.s32.totalorder %s828_s25, %s828_s25 }
  0x2e   :  { %p835_p8 = por %p834_p7, %p833_p6 }
  0x30   :  { %p836_p9 = pnand %p835_p8, %p829_p5 }
  0x32   :  { %839 = shalt.err (!%p836_p9)
}
  0x33   :  { %27 = dma.hbm_to_vmem [thread:$0]  %s1110_s0, 64, %s25_s26, [#allocation3]  }
  0x34   :  { %s919_s27 = smov [#allocation7]   ;;  %s920_s29 = smov [#allocation10]  }
  0x35   :  { %s47_s28 = sshll.u32 %s919_s27, 4  ;;  %s75_s30 = sshll.u32 %s920_s29, 4  ;;  %s48_s28 = int_to_ptr.vmem [resolvable:$true] %s47_s28  ;;  %s76_s30 = int_to_ptr.vmem [resolvable:$true] %s75_s30 }
  0x36   :  { %s840_s13 = scalar_lea.hbm %s1113_s3, 1024 }
  0x37   :  { %p841_p10 = scmp.ne.s32.totalorder %s1113_s3, %s840_s13  ;;  %p844_p11 = scmp.lt.u32.totalorder %s840_s13, %s1113_s3 }
  0x39   :  { %p846_p12 = pnand %p844_p11, %p841_p10 }
  0x3b   :  { %849 = shalt.err (!%p846_p12)
}
  0x3c   :  { %s850_s0 = scalar_lea.vmem %s48_s28, 1024  ;;  %p855_p0 = scmp.lt.s32.totalorder %s48_s28, %s48_s28 }
  0x3d   :  { %p851_p13 = scmp.ne.s32.totalorder %s48_s28, %s850_s0  ;;  %p856_p1 = scmp.lt.s32.totalorder %s850_s0, %s850_s0 }
  0x3f   :  { %p857_p2 = por %p856_p1, %p855_p0 }
  0x41   :  { %p858_p3 = pnand %p857_p2, %p851_p13 }
  0x43   :  { %861 = shalt.err (!%p858_p3)
}
  0x44   :  { %53 = dma.hbm_to_vmem [thread:$0]  %s1113_s3, 1024, %s48_s28, [#allocation6], %s915_s19, %s915_s19, %s916_s20  }
  0x45   :  { %s862_s21 = scalar_lea.hbm %s1117_s7, 1024 }
  0x46   :  { %p863_p4 = scmp.ne.s32.totalorder %s1117_s7, %s862_s21  ;;  %p866_p5 = scmp.lt.u32.totalorder %s862_s21, %s1117_s7 }
  0x48   :  { %p868_p6 = pnand %p866_p5, %p863_p4 }
  0x4a   :  { %871 = shalt.err (!%p868_p6)
}
  0x4b   :  { %s872_s24 = scalar_lea.vmem %s76_s30, 1024  ;;  %p877_p8 = scmp.lt.s32.totalorder %s76_s30, %s76_s30 }
  0x4c   :  { %p873_p7 = scmp.ne.s32.totalorder %s76_s30, %s872_s24  ;;  %p878_p9 = scmp.lt.s32.totalorder %s872_s24, %s872_s24 }
  0x4e   :  { %p879_p10 = por %p878_p9, %p877_p8 }
  0x50   :  { %p880_p11 = pnand %p879_p10, %p873_p7 }
  0x52   :  { %883 = shalt.err (!%p880_p11)
}
  0x53   :  { %81 = dma.hbm_to_vmem [thread:$0]  %s1117_s7, 1024, %s76_s30, [#allocation9], %s915_s19, %s915_s19, %s916_s20  }
  0x54   :  { %906 = dma.done.wait [#allocation3], 64  }
  0x55   :  { %907 = vsyncadd [#allocation3], 4294967232 }
  0x56   :  { %908 = dma.done.wait [#allocation6], 2048  }
  0x57   :  { %909 = vsyncadd [#allocation6], 4294965248 }
  0x58   :  { %910 = dma.done.wait [#allocation9], 2048  }
  0x59   :  { %911 = vsyncadd [#allocation9], 4294965248  ;;  %v921_v0 = vmov 0.0   ;;  %vm922_vm0 = vmmov 0   ;;  %v738_v1 = vld [vmem:[#allocation5] sm:$0xff]   ;;  %v739_v2 = vld [vmem:[#allocation5 + $0x8] sm:$0xff]  }
  0x5a   :  { %648 = vmatprep.subr.bf16.mxu0 %v921_v0  ;;  %664 = vmatprep.mubr.msk.bf16.mxu0 %vm922_vm0, %v921_v0  ;;  %v740_v3 = vld [vmem:[#allocation5 + $0x10] sm:$0xff]   ;;  %v746_v4 = vld [vmem:[#allocation7] sm:$0xff]   ;;  %v741_v5 = vld [vmem:[#allocation5 + $0x18] sm:$0xff]  }
  0x5b   :  { %668 = vmatprep.subr.bf16.mxu1 %v921_v0  ;;  %684 = vmatprep.mubr.msk.bf16.mxu1 %vm922_vm0, %v921_v0  ;;  %v747_v6 = vld [vmem:[#allocation7 + $0x8] sm:$0xff]   ;;  %v742_v7 = vld [vmem:[#allocation5 + $0x20] sm:$0xff]   ;;  %v748_v8 = vld [vmem:[#allocation7 + $0x10] sm:$0xff]  }
  0x5c   :  { %649 = vmatpush3.bf16.msra.mxu0 %v738_v1  ;;  %669 = vmatpush3.bf16.msra.mxu1 %v746_v4  ;;  %v743_v9 = vld [vmem:[#allocation5 + $0x28] sm:$0xff]   ;;  %v749_v10 = vld [vmem:[#allocation7 + $0x18] sm:$0xff]   ;;  %v744_v11 = vld [vmem:[#allocation5 + $0x30] sm:$0xff]  }
  0x5d   :  { %650 = vmatprep.subr.bf16.mxu0 %v921_v0  ;;  %670 = vmatprep.subr.bf16.mxu1 %v921_v0  ;;  %v750_v12 = vld [vmem:[#allocation7 + $0x20] sm:$0xff]   ;;  %v745_v13 = vld [vmem:[#allocation5 + $0x38] sm:$0xff]   ;;  %v751_v14 = vld [vmem:[#allocation7 + $0x28] sm:$0xff]  }
  0x5e   :  { %v100_v15 = vld [vmem:[#allocation2] sm:$0xf]  ;;  %v752_v16 = vld [vmem:[#allocation7 + $0x30] sm:$0xff]   ;;  %v754_v18 = vld [vmem:[#allocation8] sm:$0xff]  }
  0x5f   :  { %v753_v17 = vld [vmem:[#allocation7 + $0x38] sm:$0xff]   ;;  %v755_v19 = vld [vmem:[#allocation8 + $0x8] sm:$0xff]   ;;  %v756_v20 = vld [vmem:[#allocation8 + $0x10] sm:$0xff]  }
  0x60   :  { %651 = vmatpush3.bf16.msra.mxu0 %v739_v2  ;;  %671 = vmatpush3.bf16.msra.mxu1 %v747_v6  ;;  %v757_v21 = vld [vmem:[#allocation8 + $0x18] sm:$0xff]   ;;  %v758_v22 = vld [vmem:[#allocation8 + $0x20] sm:$0xff]   ;;  %v759_v23 = vld [vmem:[#allocation8 + $0x28] sm:$0xff]  }
  0x61   :  { %652 = vmatprep.subr.bf16.mxu0 %v921_v0  ;;  %672 = vmatprep.subr.bf16.mxu1 %v921_v0  ;;  %v575_v24 = vld [vmem:[%s1112_s2] ss:$0 sm:$0xff]  ;;  %v760_v32 = vld [vmem:[#allocation8 + $0x30] sm:$0xff]   ;;  %v762_v34 = vld [vmem:[#allocation10] sm:$0xff]  }
  0x62   :  { %v761_v33 = vld [vmem:[#allocation8 + $0x38] sm:$0xff]   ;;  %v763_v35 = vld [vmem:[#allocation10 + $0x8] sm:$0xff]   ;;  %v764_v36 = vld [vmem:[#allocation10 + $0x10] sm:$0xff]  }
  0x63   :  { %v765_v37 = vld [vmem:[#allocation10 + $0x18] sm:$0xff]   ;;  %v766_v38 = vld [vmem:[#allocation10 + $0x20] sm:$0xff]   ;;  %v767_v39 = vld [vmem:[#allocation10 + $0x28] sm:$0xff]  }
  0x64   :  { %653 = vmatpush3.bf16.msra.mxu0 %v740_v3  ;;  %673 = vmatpush3.bf16.msra.mxu1 %v748_v8  ;;  %v584_v40 = vld [vmem:[%s1114_s4] ss:$0 sm:$0xff]  ;;  %v768_v48 = vld [vmem:[#allocation10 + $0x30] sm:$0xff]  }
  0x65   :  { %654 = vmatprep.subr.bf16.mxu0 %v921_v0  ;;  %674 = vmatprep.subr.bf16.mxu1 %v921_v0  ;;  %v769_v49 = vld [vmem:[#allocation10 + $0x38] sm:$0xff]  }
  0x66   :  { %v593_v50 = vld [vmem:[%s1116_s6] ss:$0 sm:$0xff]  ;;  %s923_s6 = smov [#allocation11]  }
  0x67   :  { %v602_v58 = vld [vmem:[%s1118_s8] ss:$0 sm:$0xff]  ;;  %s564_s11 = sshll.u32 %s923_s6, 4  ;;  %s565_s11 = int_to_ptr.vmem [resolvable:$true] %s564_s11 }
  0x68   :  { %655 = vmatpush3.bf16.msra.mxu0 %v741_v5  ;;  %675 = vmatpush3.bf16.msra.mxu1 %v749_v10  ;;  %s884_s12 = scalar_lea.vmem %s565_s11, 128  ;;  %p889_p13 = scmp.lt.s32.totalorder %s565_s11, %s565_s11 }
  0x69   :  { %656 = vmatprep.subr.bf16.mxu0 %v921_v0  ;;  %676 = vmatprep.subr.bf16.mxu1 %v921_v0  ;;  %p885_p12 = scmp.ne.s32.totalorder %s565_s11, %s884_s12  ;;  %p890_p0 = scmp.lt.s32.totalorder %s884_s12, %s884_s12 }
  0x6b   :  { %p891_p1 = por %p890_p0, %p889_p13 }
  0x6c   :  { %657 = vmatpush3.bf16.msra.mxu0 %v742_v7  ;;  %677 = vmatpush3.bf16.msra.mxu1 %v750_v12 }
  0x6d   :  { %658 = vmatprep.subr.bf16.mxu0 %v921_v0  ;;  %678 = vmatprep.subr.bf16.mxu1 %v921_v0  ;;  %p892_p2 = pnand %p891_p1, %p885_p12 }
  0x70   :  { %659 = vmatpush3.bf16.msra.mxu0 %v743_v9  ;;  %679 = vmatpush3.bf16.msra.mxu1 %v751_v14 }
  0x71   :  { %660 = vmatprep.subr.bf16.mxu0 %v921_v0  ;;  %680 = vmatprep.subr.bf16.mxu1 %v921_v0 }
  0x74   :  { %661 = vmatpush3.bf16.msra.mxu0 %v744_v11  ;;  %681 = vmatpush3.bf16.msra.mxu1 %v752_v16 }
  0x75   :  { %662 = vmatprep.subr.bf16.mxu0 %v921_v0  ;;  %682 = vmatprep.subr.bf16.mxu1 %v921_v0 }
  0x78   :  { %663 = vmatpush3.bf16.msra.mxu0 %v745_v13  ;;  %683 = vmatpush3.bf16.msra.mxu1 %v753_v17 }
  0x79   :  { %688 = vmatprep.subr.bf16.mxu0 %v921_v0  ;;  %708 = vmatprep.subr.bf16.mxu1 %v921_v0 }
  0x7b   :  { %665 = vmatmul.mubr.bf16.vlgmr.msra.gmra.mrb[0].mxu0 %v100_v15 }
  0x7c   :  { %704 = vmatprep.mubr.msk.bf16.mxu0 %vm922_vm0, %v921_v0  ;;  %689 = vmatpush3.bf16.msra.mxu0 %v754_v18 }
  0x7d   :  { %690 = vmatprep.subr.bf16.mxu0 %v921_v0 }
  0x80   :  { %691 = vmatpush3.bf16.msra.mxu0 %v755_v19 }
  0x81   :  { %692 = vmatprep.subr.bf16.mxu0 %v921_v0 }
  0x84   :  { %693 = vmatpush3.bf16.msra.mxu0 %v756_v20 }
  0x85   :  { %694 = vmatprep.subr.bf16.mxu0 %v921_v0 }
  0x88   :  { %695 = vmatpush3.bf16.msra.mxu0 %v757_v21 }
  0x89   :  { %696 = vmatprep.subr.bf16.mxu0 %v921_v0 }
  0x8c   :  { %697 = vmatpush3.bf16.msra.mxu0 %v758_v22 }
  0x8d   :  { %698 = vmatprep.subr.bf16.mxu0 %v921_v0 }
  0x90   :  { %699 = vmatpush3.bf16.msra.mxu0 %v759_v23 }
  0x91   :  { %700 = vmatprep.subr.bf16.mxu0 %v921_v0 }
  0x94   :  { %701 = vmatpush3.bf16.msra.mxu0 %v760_v32 }
  0x95   :  { %702 = vmatprep.subr.bf16.mxu0 %v921_v0 }
  0x98   :  { %703 = vmatpush3.bf16.msra.mxu0 %v761_v33 }
 0x14e   :  { %v206_v25 = vpop.f32.mrb[0].mxu0 }
 0x14f   :  { %v207_v26 = vadd.f32 %v575_v24, %v206_v25  ;;  %v666_v27 = vpop.f32.mrb[1].mxu0 }
 0x150   :  { %v209_v28 = vpop.f32.mrb[2].mxu0 }
 0x151   :  { %v212_v29 = vmax.f32 %v207_v26, 0.0  ;;  %v667_v30 = vpop.f32.mrb[3].mxu0 }
 0x153   :  { %v213_v31 = vpack.c.bf16 %v212_v29, %v212_v29 }
 0x155   :  { %685 = vmatmul.mubr.bf16.vlgmr.msra.gmra.mrb[0].mxu1 %v213_v31 }
 0x156   :  { %724 = vmatprep.mubr.msk.bf16.mxu1 %vm922_vm0, %v921_v0  ;;  %709 = vmatpush3.bf16.msra.mxu1 %v762_v34 }
 0x157   :  { %710 = vmatprep.subr.bf16.mxu1 %v921_v0 }
 0x15a   :  { %711 = vmatpush3.bf16.msra.mxu1 %v763_v35 }
 0x15b   :  { %712 = vmatprep.subr.bf16.mxu1 %v921_v0 }
 0x15e   :  { %713 = vmatpush3.bf16.msra.mxu1 %v764_v36 }
 0x15f   :  { %714 = vmatprep.subr.bf16.mxu1 %v921_v0 }
 0x162   :  { %715 = vmatpush3.bf16.msra.mxu1 %v765_v37 }
 0x163   :  { %716 = vmatprep.subr.bf16.mxu1 %v921_v0 }
 0x166   :  { %717 = vmatpush3.bf16.msra.mxu1 %v766_v38 }
 0x167   :  { %718 = vmatprep.subr.bf16.mxu1 %v921_v0 }
 0x16a   :  { %719 = vmatpush3.bf16.msra.mxu1 %v767_v39 }
 0x16b   :  { %720 = vmatprep.subr.bf16.mxu1 %v921_v0 }
 0x16e   :  { %721 = vmatpush3.bf16.msra.mxu1 %v768_v48 }
 0x16f   :  { %722 = vmatprep.subr.bf16.mxu1 %v921_v0 }
 0x172   :  { %723 = vmatpush3.bf16.msra.mxu1 %v769_v49 }
 0x228   :  { %v319_v41 = vpop.f32.mrb[0].mxu1 }
 0x229   :  { %v320_v42 = vadd.f32 %v584_v40, %v319_v41  ;;  %v686_v43 = vpop.f32.mrb[1].mxu1 }
 0x22a   :  { %v322_v44 = vpop.f32.mrb[2].mxu1 }
 0x22b   :  { %v325_v45 = vmax.f32 %v320_v42, 0.0  ;;  %v687_v46 = vpop.f32.mrb[3].mxu1 }
 0x22d   :  { %v326_v47 = vpack.c.bf16 %v325_v45, %v325_v45 }
 0x22f   :  { %705 = vmatmul.mubr.bf16.vlgmr.msra.gmra.mrb[4].mxu0 %v326_v47 }
 0x302   :  { %v432_v51 = vpop.f32.mrb[4].mxu0 }
 0x303   :  { %v433_v52 = vadd.f32 %v593_v50, %v432_v51  ;;  %v706_v53 = vpop.f32.mrb[5].mxu0 }
 0x304   :  { %v435_v54 = vpop.f32.mrb[6].mxu0 }
 0x305   :  { %v438_v55 = vmax.f32 %v433_v52, 0.0  ;;  %v707_v56 = vpop.f32.mrb[7].mxu0 }
 0x307   :  { %v439_v57 = vpack.c.bf16 %v438_v55, %v438_v55 }
 0x309   :  { %725 = vmatmul.mubr.bf16.vlgmr.msra.gmra.mrb[4].mxu1 %v439_v57 }
 0x3dc   :  { %v545_v59 = vpop.f32.mrb[4].mxu1 }
 0x3dd   :  { %v546_v60 = vadd.f32 %v602_v58, %v545_v59  ;;  %v726_v61 = vpop.f32.mrb[5].mxu1 }
 0x3de   :  { %v548_v62 = vpop.f32.mrb[6].mxu1 }
 0x3df   :  { %v611_v63 = vmul.f32 -1.442695, %v546_v60  ;;  %v727_v0 = vpop.f32.mrb[7].mxu1 }
 0x3e1   :  { %770 = vpow2.f32 %v611_v63 }
 0x3eb   :  { %v771_v1 = vpop.eup %770 }
 0x3ec   :  { %v554_v2 = vadd.f32 1.0, %v771_v1 }
 0x3ee   :  { %772 = vrcp.f32 %v554_v2 }
 0x3f8   :  { %v773_v3 = vpop.eup %772 }
 0x3f9   :  { %557 = vst [vmem:[#allocation11] sm:$0xff] %v773_v3 }
 0x3fa   :  { %895 = shalt.err (!%p892_p2)
}
 0x3fb   :  { %s896_s1 = scalar_lea.hbm %s1119_s9, 128 }
 0x3fc   :  { %p897_p3 = scmp.ne.s32.totalorder %s1119_s9, %s896_s1  ;;  %p900_p4 = scmp.lt.u32.totalorder %s896_s1, %s1119_s9 }
 0x3fe   :  { %p902_p5 = pnand %p900_p4, %p897_p3 }
 0x400   :  { %905 = shalt.err (!%p902_p5)
}
 0x401   :  { %567 = dma.vmem_to_hbm [thread:$0]  %s565_s11, 128, %s1119_s9, [#allocation4]  }
 0x402   :  { %912 = dma.done.wait [#allocation4], 128  }
 0x403   :  { %913 = vsyncadd [#allocation4], 4294967168 }
 0x404   :  { %571 = vsyncpa [#allocation3], 1 }
 0x405   :  { %572 = vsyncpa [#allocation6], 1 }
 0x406   :  { %573 = vsyncpa [#allocation9], 1 }
 0x407   :  { %574 = vsyncpa [#allocation4], 1 }

</bundles_post_ra>
